<compile_context>
chip_gen: v7x
topology: tpu7x:2x2x1
jax: 0.10.0
libtpu: 0.0.40
codegen_flags: <defaults>
</compile_context>

<pallas_src>
import jax
import jax.numpy as jnp
from jax.experimental import pallas as pl
from jax.experimental.pallas import tpu as pltpu

_LANE = 128


def _pad_to(n, m):
    return ((n + m - 1) // m) * m


def _attention_kernel(x_ref, wt_ref, b_ref, o_ref):
    # x_ref : (Hp, Hp) bf16  -- one batch; rows = padded seq, cols = padded hidden
    # wt_ref: (Hp, Hp) bf16  -- weight pre-transposed to (in, out) layout
    # b_ref : (1,  Hp) f32   -- bias; padded columns hold -1e30 (softmax mask)
    # o_ref : (Hp, Hp) f32
    x = x_ref[...]

    # Linear: one lane-dense 2-D MXU matmul, f32 accumulation.
    logits = jnp.dot(x, wt_ref[...], preferred_element_type=jnp.float32)
    logits = logits + b_ref[...]                      # (Hp,Hp) + (1,Hp) broadcast

    # Numerically stable softmax over the last (lane) dim, f32 throughout.
    # Padded columns carry bias -1e30 -> exp underflows to exactly 0.
    m = jnp.max(logits, axis=-1, keepdims=True)
    p = jnp.exp(logits - m)
    denom = jnp.sum(p, axis=-1, keepdims=True)
    attn = p / denom                                  # exact divide: rows sum to 1

    # output = attn @ x.  Padded attn columns are exactly 0 and padded x rows
    # are 0, so the padding contributes nothing to the contraction.
    out = jnp.dot(attn.astype(x.dtype), x, preferred_element_type=jnp.float32)
    o_ref[...] = out.astype(o_ref.dtype)


def prepare_params(w, b):
    """One-time parameter prep: transpose to (in, out), pad to lane width, cast.

    w: [H, H] PyTorch Linear weight (out, in); b: [H].
    """
    H = w.shape[0]
    Hp = _pad_to(H, _LANE)
    wt = jnp.zeros((Hp, Hp), jnp.float32).at[:H, :H].set(w.T).astype(jnp.bfloat16)
    # Padded output columns get a huge negative bias so softmax assigns them
    # exactly zero weight (exp underflows to 0 in f32).
    bp = jnp.full((1, Hp), -1e30, jnp.float32).at[0, :H].set(b)
    return wt, bp


def attention_layer(x, wt_pad, b_pad):
    """x: [B, S, H] f32; wt_pad/b_pad from prepare_params. Requires S == H."""
    B, S, H = x.shape
    assert S == H, "torch.matmul(attn, x) in the reference requires seq == hidden"
    Hp = wt_pad.shape[0]

    # Pad both the seq axis (contraction dim of the 2nd matmul) and the hidden
    # axis to the lane width in the wrapper (layout plumbing, not compute),
    # and cast the matmul inputs to bf16.
    xp = jnp.zeros((B, Hp, Hp), jnp.float32).at[:, :S, :H].set(x)
    xp = xp.astype(jnp.bfloat16)

    flops = 2 * 2 * B * Hp * Hp * Hp                  # two (Hp,Hp)@(Hp,Hp) per batch
    bytes_accessed = (xp.size * 2 + wt_pad.size * 2 + b_pad.size * 4
                      + B * Hp * Hp * 4)

    out_pad = pl.pallas_call(
        _attention_kernel,
        out_shape=jax.ShapeDtypeStruct((B, Hp, Hp), jnp.float32),
        grid=(B,),
        in_specs=[
            pl.BlockSpec((None, Hp, Hp), lambda bi: (bi, 0, 0)),   # x[b] (squeezed)
            pl.BlockSpec((Hp, Hp), lambda bi: (0, 0)),             # weight (shared)
            pl.BlockSpec((1, Hp), lambda bi: (0, 0)),              # bias   (shared)
        ],
        out_specs=pl.BlockSpec((None, Hp, Hp), lambda bi: (bi, 0, 0)),
        compiler_params=pltpu.CompilerParams(
            dimension_semantics=("parallel",)),        # v7x: shard batch over 2 TCs
        cost_estimate=pl.CostEstimate(
            flops=flops,
            transcendentals=B * Hp * Hp,
            bytes_accessed=bytes_accessed),
    )(xp, wt_pad, b_pad)

    # TODO(synk): for large hidden, tile the (Hp, Hp) weight over a K grid axis
    # marked "arbitrary" with a pl.when-initialized f32 VMEM accumulator and set
    # vmem_limit_bytes explicitly (v7x has only 64 MiB VMEM); for large B*S,
    # tile the row axis (>=512 rows per block) instead of one block per batch.
    return out_pad[:, :S, :H]


def _reference(xr, wr, br):
    logits = jnp.einsum("bsh,oh->bso", xr, wr) + br
    attn = jax.nn.softmax(logits, axis=-1)
    return jnp.einsum("bsk,bkh->bsh", attn, xr)


if __name__ == "__main__":
    B, S, H = 2, 32, 32   # hidden_dim = 32; the reference matmul needs seq == hidden

    key = jax.random.PRNGKey(0)
    kx, kw, kb = jax.random.split(key, 3)
    x = jax.random.normal(kx, (B, S, H), dtype=jnp.float32)
    # Deterministic "Linear(hidden_dim, hidden_dim)" params (PyTorch (out, in) layout).
    w = jax.random.normal(kw, (H, H), dtype=jnp.float32) * (1.0 / jnp.sqrt(H))
    b = jax.random.normal(kb, (H,), dtype=jnp.float32) * 0.01

    wt_pad, b_pad = prepare_params(w, b)      # one-time param prep (not per call)
    out = attention_layer(x, wt_pad, b_pad)
    out = jax.block_until_ready(out)

    # Tight check against the kernel's numeric contract: bf16-rounded matmul
    # inputs, f32 accumulation / softmax.
    x_r = x.astype(jnp.bfloat16).astype(jnp.float32)
    w_r = w.astype(jnp.bfloat16).astype(jnp.float32)
    ref_bf16_in = _reference(x_r, w_r, b)
    assert jnp.allclose(out, ref_bf16_in, atol=2e-2, rtol=2e-2), \
        "mismatch vs bf16-input reference"

    # Looser check against the original full-f32 module semantics.
    ref_f32 = _reference(x, w, b)
    assert jnp.allclose(out, ref_f32, atol=5e-2, rtol=5e-2), \
        "mismatch vs f32 reference"

    print("KERNEL_OK")
</pallas_src>

<mosaic_0001>
module attributes {stable_mosaic.version = 11 : i64} {
  func.func @_attention_kernel(%arg0: i32, %arg1: memref<1x128x128xbf16, #tpu.memory_space<vmem>>, %arg2: memref<128x128xbf16, #tpu.memory_space<vmem>>, %arg3: memref<1x128xf32, #tpu.memory_space<vmem>>, %arg4: memref<1x128x128xf32, #tpu.memory_space<vmem>>) attributes {dimension_semantics = [#tpu.dimension_semantics<parallel>], iteration_bounds = array<i64: 2>, scalar_prefetch = 0 : i64, scratch_operands = 0 : i64, tpu.core_type = #tpu.core_type<tc>, window_params = [{transform_indices = @transform_0, window_bounds = array<i64: 1, 128, 128>}, {pipeline_mode = #tpu.pipeline_mode<synchronous>, transform_indices = @transform_1, window_bounds = array<i64: 128, 128>}, {pipeline_mode = #tpu.pipeline_mode<synchronous>, transform_indices = @transform_2, window_bounds = array<i64: 1, 128>}, {transform_indices = @transform_3, window_bounds = array<i64: 1, 128, 128>}]} {
    %c0 = arith.constant 0 : index
    %c0_0 = arith.constant 0 : index
    %c0_1 = arith.constant 0 : index
    %0 = vector.load %arg1[%c0, %c0_0, %c0_1] : memref<1x128x128xbf16, #tpu.memory_space<vmem>>, vector<1x128x128xbf16>
    %1 = vector.shape_cast %0 : vector<1x128x128xbf16> to vector<128x128xbf16>
    %c0_2 = arith.constant 0 : index
    %c0_3 = arith.constant 0 : index
    %2 = vector.load %arg2[%c0_2, %c0_3] : memref<128x128xbf16, #tpu.memory_space<vmem>>, vector<128x128xbf16>
    %cst = arith.constant dense<0.000000e+00> : vector<128x128xf32>
    %3 = tpu.matmul %1, %2, %cst {dimension_numbers = #tpu.dot_dimension_numbers<[1], [0], [0], [1], [0, 0, 1, 1], [], []>} : vector<128x128xbf16>, vector<128x128xbf16>, vector<128x128xf32> -> vector<128x128xf32>
    %c0_4 = arith.constant 0 : index
    %c0_5 = arith.constant 0 : index
    %4 = vector.load %arg3[%c0_4, %c0_5] : memref<1x128xf32, #tpu.memory_space<vmem>>, vector<1x128xf32>
    %5 = vector.broadcast %4 : vector<1x128xf32> to vector<128x128xf32>
    %6 = arith.addf %3, %5 : vector<128x128xf32>
    %cst_6 = arith.constant dense<0xFF800000> : vector<128xf32>
    %7 = vector.multi_reduction <maximumf>, %6, %cst_6 [1] : vector<128x128xf32> to vector<128xf32>
    %8 = vector.shape_cast %7 : vector<128xf32> to vector<128x1xf32>
    %9 = vector.broadcast %8 : vector<128x1xf32> to vector<128x128xf32>
    %10 = arith.subf %6, %9 : vector<128x128xf32>
    %11 = math.exp %10 : vector<128x128xf32>
    %cst_7 = arith.constant dense<0.000000e+00> : vector<128xf32>
    %12 = vector.multi_reduction <add>, %11, %cst_7 [1] : vector<128x128xf32> to vector<128xf32>
    %13 = vector.shape_cast %12 : vector<128xf32> to vector<128x1xf32>
    %14 = vector.broadcast %13 : vector<128x1xf32> to vector<128x128xf32>
    %15 = arith.divf %11, %14 : vector<128x128xf32>
    %16 = arith.truncf %15 : vector<128x128xf32> to vector<128x128xbf16>
    %cst_8 = arith.constant dense<0.000000e+00> : vector<128x128xf32>
    %17 = tpu.matmul %16, %1, %cst_8 {dimension_numbers = #tpu.dot_dimension_numbers<[1], [0], [0], [1], [0, 0, 1, 1], [], []>} : vector<128x128xbf16>, vector<128x128xbf16>, vector<128x128xf32> -> vector<128x128xf32>
    %c0_9 = arith.constant 0 : index
    %c0_10 = arith.constant 0 : index
    %c0_11 = arith.constant 0 : index
    %18 = vector.load %arg4[%c0_9, %c0_10, %c0_11] : memref<1x128x128xf32, #tpu.memory_space<vmem>>, vector<1x128x128xf32>
    %19 = vector.shape_cast %18 : vector<1x128x128xf32> to vector<128x128xf32>
    %20 = vector.shape_cast %17 : vector<128x128xf32> to vector<1x128x128xf32>
    tpu.vector_store %arg4[%c0_9, %c0_10, %c0_11], %20 {strides = array<i32>} : memref<1x128x128xf32, #tpu.memory_space<vmem>>, vector<1x128x128xf32>,
    return
  }
  func.func @transform_0(%arg0: i32) -> (i32, i32, i32) {
    %c0_i32 = arith.constant 0 : i32
    %c0_i32_0 = arith.constant 0 : i32
    %c0_i32_1 = arith.constant 0 : i32
    return %arg0, %c0_i32, %c0_i32_0 : i32, i32, i32
  }
  func.func @transform_1(%arg0: i32) -> (i32, i32) {
    %c0_i32 = arith.constant 0 : i32
    %c0_i32_0 = arith.constant 0 : i32
    %c0_i32_1 = arith.constant 0 : i32
    return %c0_i32, %c0_i32_0 : i32, i32
  }
  func.func @transform_2(%arg0: i32) -> (i32, i32) {
    %c0_i32 = arith.constant 0 : i32
    %c0_i32_0 = arith.constant 0 : i32
    %c0_i32_1 = arith.constant 0 : i32
    return %c0_i32, %c0_i32_0 : i32, i32
  }
  func.func @transform_3(%arg0: i32) -> (i32, i32, i32) {
    %c0_i32 = arith.constant 0 : i32
    %c0_i32_0 = arith.constant 0 : i32
    %c0_i32_1 = arith.constant 0 : i32
    return %arg0, %c0_i32, %c0_i32_0 : i32, i32, i32
  }
}

</mosaic_0001>

<bundles_post_ra>
// kernel: tpu_custom_call.1
= control target key start
LH: loop header
LB: loop body
LE: loop exit
PB: predicated region body
PF: predicated region fallthrough
CT: control target
= control target key end

     0   :  { %8 = vsyncpa [#allocation3], 0  ;;  %s1560_s0 = inlined_call_operand.hbm [shape: bf16[2,128,128], index: 0, kind: input, shape index: {}]   ;;  %s1561_s1 = inlined_call_operand.hbm [shape: bf16[128,128], index: 1, kind: input, shape index: {}]   ;;  %s1562_s2 = inlined_call_operand.vmem [shape: f32[1,128], index: 2, kind: input, shape index: {}]   ;;  %s1563_s3 = inlined_call_operand.hbm [shape: f32[2,128,128], index: 3, kind: output, shape index: {}]  }
   0x1   :  { %10 = vsyncpa [#allocation3 + $0x1], 0 }
   0x2   :  { %11 = vsyncpa [#allocation6], 0 }
   0x3   :  { %12 = vsyncpa [#allocation4], 0 }
   0x4   :  { %14 = vsyncpa [#allocation4 + $0x1], 0  ;;  %s1228_s12 = smov 0   ;;  %s1230_s13 = smov 0  }
   0x5   :  { %s1232_s14 = smov 0   ;;  %s1234_s15 = smov 0  }
   0x6 LB: > { %s1249_s16 = sadd.s32 4294967295, %s1199_s15   ;;  %s799_s17 = sadd.s32 4294967294, %s1199_s15   ;;  %s1199_s15 = sphi %s1234_s15, %s1583_s15   ;;  %s1195_s14 = sphi %s1232_s14, %s1582_s14   ;;  %s1191_s13 = sphi %s1230_s13, %s1581_s13   ;;  %s1187_s12 = sphi %s1228_s12, %s1580_s12  }
   0x7   : > { %p40_p0 = scmp.ne.s32.totalorder %s1191_s13, %s1187_s12  ;;  %p1564_p1 = scmp.eq.s32.totalorder %s1249_s16, 0 }
   0x8   : > { %p112_p3 = scmp.eq.s32.totalorder %s799_s17, 1  ;;  %p800_p5 = scmp.ge.s32.totalorder %s1199_s15, 1 }
   0x9   : > { %p1258_p4 = por %p1564_p1, %p40_p0  ;;  %p119_p7 = scmp.lt.s32.totalorder %s1199_s15, 3 }
   0xa   : > { %p1263_p6 = por %p112_p3, %p40_p0  ;;  %s1201_s21 = smov [#allocation5]  }
   0xb   : > { %s1567_s18 = scalar_select %p1258_p4, 1, 0 }
   0xc   : > { %s1568_s19 = scalar_select %p1263_p6, 1, 0 }
   0xd   : > { %p1268_p8 = pnand %p800_p5, %p119_p7  ;;  %s131_s22 = sshll.u32 %s1201_s21, 4  ;;  %s1272_s22 = int_to_ptr.vmem [resolvable:$true] %s131_s22 }
   0xe   : > { %s1284_s24 = sadd.s32 1, %s1199_s15   ;;  %s27_s25 = sadd.s32 1, %s1195_s14 }
   0xf   : > { %s1569_s20 = scalar_select %p1268_p8, 1, 0 }
  0x10   : > { %p938_p9 = pneg %p1268_p8  ;;  %s24_s26 = ssub.s32 %s1199_s15, %s1284_s24 }
  0x11   : > { %s1071_s29 = scalar_lea.hbm %s1561_s1, 1024 }
  0x12   : > { %p1279_p11 = pnand %p938_p9, %p1564_p1  ;;  %p1072_p12 = scmp.ne.s32.totalorder %s1561_s1, %s1071_s29 }
  0x13   : > { %p1078_p5 = scmp.lt.u32.totalorder %s1071_s29, %s1561_s1 }
  0x14   : > { %p1073_p13 = pneg %p1279_p11 }
  0x16   : > { %p1074_p0 = pnand %p1073_p13, %p1072_p12 }
  0x18   : > { %p1075_p3 = pneg %p1074_p0 }
  0x1a   : > { %p1080_p7 = pnand %p1078_p5, %p1075_p3 }
  0x1c   : > { %1083 = shalt.err (!%p1080_p7)
}
  0x1d   : > { %s1084_s7 = scalar_lea.vmem %s1272_s22, 1024  ;;  %p1092_p2 = scmp.lt.s32.totalorder %s1272_s22, %s1272_s22 }
  0x1e   : > { %p1085_p9 = scmp.ne.s32.totalorder %s1272_s22, %s1084_s7  ;;  %p1093_p6 = scmp.lt.s32.totalorder %s1084_s7, %s1084_s7 }
  0x20   : > { %p1087_p10 = pnand %p1085_p9, %p1073_p13  ;;  %p1094_p4 = por %p1093_p6, %p1092_p2 }
  0x22   : > { %p1088_p1 = pneg %p1087_p10 }
  0x24   : > { %p1095_p8 = pnand %p1094_p4, %p1088_p1 }
  0x26   : > { %1098 = shalt.err (!%p1095_p8)
}
  0x27   : > { %s1202_s8 = smov 64   ;;  %s1203_s9 = smov 4  }
  0x28   : > { %941 = dma.hbm_to_vmem [thread:$0]  (!%p1279_p11), %s1561_s1, 1024, %s1272_s22, [#allocation6], %s1202_s8, %s1202_s8, %s1203_s9  }
  0x29   : > { %p25_p1 = scmp.eq.s32.totalorder %s24_s26, 0  ;;  %p34_p2 = scmp.ne.s32.totalorder %s1195_s14, %s1191_s13 }
  0x2a   : > { %p35_p4 = scmp.eq.s32.totalorder %s1199_s15, 0  ;;  %p951_p6 = scmp.lt.s32.totalorder %s1199_s15, 2 }
  0x2b   : > { %s1318_s17 = scalar_select %p25_p1, %s1195_s14, %s27_s25  }
  0x2c   : > { %p36_p8 = por %p35_p4, %p34_p2  ;;  %p1571_p10 = scmp.eq.s32.totalorder %s1249_s16, 1 }
  0x2d   : > { %s148_s23 = sand.u32 1, %s1195_s14   ;;  %s832_s27 = sshll.u32 %s1199_s15, 10 }
  0x2e   : > { %p1322_p12 = por %p1571_p10, %p34_p2  ;;  %s803_s28 = sshll.u32 %s148_s23, 6 }
  0x2f   : > { %s1331_s4 = scalar_lea.hbm %s1560_s0, %s832_s27  ;;  %s152_s22 = scalar_lea.vmem [#allocation2], %s803_s28 }
  0x30   : > { %s159_s25 = sshll.u32 %s152_s22, 4  ;;  %p1333_p11 = pnand %p951_p6, %p36_p8  ;;  %s1337_s25 = int_to_ptr.vmem [resolvable:$true] %s159_s25 }
  0x31   : > { %s1339_s5 = scalar_lea.sflag [#allocation3], %s148_s23  ;;  %s1099_s6 = scalar_lea.hbm %s1331_s4, 1024 }
  0x32   : > { %p1100_p13 = scmp.ne.s32.totalorder %s1331_s4, %s1099_s6  ;;  %p1101_p0 = pneg %p1333_p11 }
  0x33   : > { %s1104_s11 = scalar_lea.hbm %s1560_s0, 2048  ;;  %p1105_p7 = scmp.lt.u32.totalorder %s1331_s4, %s1560_s0 }
  0x34   : > { %p1102_p3 = pnand %p1101_p0, %p1100_p13  ;;  %p1106_p9 = scmp.lt.u32.totalorder %s1104_s11, %s1099_s6 }
  0x35   : > { %p1108_p2 = scmp.lt.u32.totalorder %s1099_s6, %s1331_s4 }
  0x36   : > { %p1103_p5 = pneg %p1102_p3  ;;  %p1107_p1 = por %p1106_p9, %p1105_p7 }
  0x38   : > { %p1109_p4 = por %p1108_p2, %p1107_p1 }
  0x3a   : > { %p1110_p6 = pnand %p1109_p4, %p1103_p5 }
  0x3c   : > { %1113 = shalt.err (!%p1110_p6)
}
  0x3d   : > { %s1114_s23 = scalar_lea.vmem %s1337_s25, 1024  ;;  %s1204_s29 = smov [#allocation2]  }
  0x3e   : > { %p1115_p8 = scmp.ne.s32.totalorder %s1337_s25, %s1114_s23  ;;  %s1119_s30 = sshll.u32 %s1204_s29, 4  ;;  %s1120_s30 = int_to_ptr.vmem [resolvable:$false] %s1119_s30 }
  0x3f   : > { %s1121_s22 = scalar_lea.vmem %s1120_s30, 2048  ;;  %p1122_p3 = scmp.lt.s32.totalorder %s1337_s25, %s1120_s30 }
  0x40   : > { %p1117_p10 = pnand %p1115_p8, %p1101_p0  ;;  %p1123_p7 = scmp.lt.s32.totalorder %s1121_s22, %s1114_s23 }
  0x42   : > { %p1118_p13 = pneg %p1117_p10  ;;  %p1124_p9 = por %p1123_p7, %p1122_p3 }
  0x44   : > { %p1125_p1 = pnand %p1124_p9, %p1118_p13 }
  0x46   : > { %1128 = shalt.err (!%p1125_p1)
}
  0x47   : > { %945 = dma.hbm_to_vmem [thread:$0]  (!%p1333_p11), %s1331_s4, 1024, %s1337_s25, %s1339_s5, %s1202_s8, %s1202_s8, %s1203_s9  }
  0x48   : > { %p1574_p0 = scmp.ne.s32.totalorder %s1569_s20, 0 }
  0x49   : > { %s1373_s6 = sand.u32 (!%p1574_p0), 1, %s1191_s13   ;;  %p1575_p5 = scmp.ne.s32.totalorder (!%p1574_p0), %s1567_s18, 0 }
  0x4a   : > { %171 = sbr.rel (%p1574_p0) target bundleno = 909 (0x38d), region = 32  ;;  %s807_s7 = sshll.u32 (!%p1574_p0), %s1373_s6, 6 }
  0x4b   : > { %s174_s10 = scalar_lea.sflag (!%p1574_p0), [#allocation3], %s1373_s6  ;;  %s1377_s11 = scalar_lea.vmem (!%p1574_p0), [#allocation2], %s807_s7 }
  0x51   : > { %1174 = dma.done.wait (%p1575_p5), %s174_s10, 1024  }
  0x52   : > { %1176 = vsyncadd (%p1575_p5), %s174_s10, 4294966272  ;;  %p1576_p11 = scmp.eq.s32.totalorder %s1249_s16, 0 }
  0x54   : > { %1178 = dma.done.wait (%p1576_p11), [#allocation6], 1024   ;;  %p1577_p2 = pmov %p1576_p11 }
  0x55   : > { %v991_v0 = vld [vmem:[#allocation5] sm:$0xff]   ;;  %v992_v1 = vld [vmem:[#allocation5 + $0x8] sm:$0xff]   ;;  %v993_v2 = vld [vmem:[#allocation5 + $0x10] sm:$0xff]   ;;  %s809_s8 = sshll.u32 %s1373_s6, 7  ;;  %s833_s4 = sshll.u32 %s1249_s16, 11 }
  0x56   : > { %1180 = vsyncadd (%p1577_p2), [#allocation6], 4294966272  ;;  %866 = vmatprep.subr.bf16.mxu0 %v991_v0  ;;  %v994_v3 = vld [vmem:[#allocation5 + $0x18] sm:$0xff]   ;;  %v999_v4 = vld [vmem:[%s1377_s11] sm:$0xff]   ;;  %s1491_s9 = scalar_lea.vmem [#allocation7], %s809_s8  ;;  %s1511_s27 = scalar_lea.hbm %s1563_s3, %s833_s4 }
  0x57   : > { %867 = vmatpush3.bf16.msra.mxu0 %v991_v0  ;;  %882 = vmatprep.mubr.bf16.mxu0 %v999_v4  ;;  %v1000_v5 = vld [vmem:[%s1377_s11 + $0x8] sm:$0xff]   ;;  %v995_v6 = vld [vmem:[#allocation5 + $0x20] sm:$0xff]   ;;  %v1001_v7 = vld [vmem:[%s1377_s11 + $0x10] sm:$0xff]   ;;  %s716_s25 = sshll.u32 %s1491_s9, 4  ;;  %s703_s16 = scalar_lea.sflag [#allocation4], %s1373_s6  ;;  %s1513_s25 = int_to_ptr.vmem [resolvable:$true] %s716_s25 }
  0x58   : > { %868 = vmatprep.subr.bf16.mxu0 %v992_v1  ;;  %898 = vmatprep.subr.bf16.mxu1 %v999_v4  ;;  %v996_v8 = vld [vmem:[#allocation5 + $0x28] sm:$0xff]   ;;  %v1002_v9 = vld [vmem:[%s1377_s11 + $0x18] sm:$0xff]   ;;  %v997_v10 = vld [vmem:[#allocation5 + $0x30] sm:$0xff]   ;;  %s1129_s28 = scalar_lea.vmem %s1513_s25, 2048  ;;  %s1205_s23 = smov [#allocation7]  }
  0x59   : > { %899 = vmatpush3.bf16.msra.mxu1 %v999_v4  ;;  %v1003_v11 = vld [vmem:[%s1377_s11 + $0x20] sm:$0xff]   ;;  %v998_v12 = vld [vmem:[#allocation5 + $0x38] sm:$0xff]   ;;  %v1004_v13 = vld [vmem:[%s1377_s11 + $0x28] sm:$0xff]   ;;  %p1130_p4 = scmp.ne.s32.totalorder %s1513_s25, %s1129_s28  ;;  %s1133_s29 = sshll.u32 %s1205_s23, 4  ;;  %s1134_s29 = int_to_ptr.vmem [resolvable:$false] %s1133_s29 }
  0x5a   : > { %900 = vmatprep.subr.bf16.mxu1 %v1000_v5  ;;  %v1005_v14 = vld [vmem:[%s1377_s11 + $0x30] sm:$0xff]   ;;  %v1006_v15 = vld [vmem:[%s1377_s11 + $0x38] sm:$0xff]   ;;  %v810_v16 = vld [vmem:[%s1562_s2] ss:$0 sm:$0xff]  ;;  %s1135_s30 = scalar_lea.vmem %s1134_s29, 4096  ;;  %p1136_p10 = scmp.lt.s32.totalorder %s1513_s25, %s1134_s29 }
  0x5b   : > { %869 = vmatpush3.bf16.msra.mxu0 %v992_v1  ;;  %p1131_p6 = pnand %p1130_p4, %p1322_p12  ;;  %p1137_p13 = scmp.lt.s32.totalorder %s1135_s30, %s1129_s28 }
  0x5c   : > { %870 = vmatprep.subr.bf16.mxu0 %v993_v2 }
  0x5d   : > { %901 = vmatpush3.bf16.msra.mxu1 %v1000_v5  ;;  %p1132_p8 = pneg %p1131_p6  ;;  %p1138_p3 = por %p1137_p13, %p1136_p10 }
  0x5e   : > { %902 = vmatprep.subr.bf16.mxu1 %v1001_v7 }
  0x5f   : > { %871 = vmatpush3.bf16.msra.mxu0 %v993_v2  ;;  %p1139_p7 = pnand %p1138_p3, %p1132_p8 }
  0x60   : > { %872 = vmatprep.subr.bf16.mxu0 %v994_v3 }
  0x61   : > { %903 = vmatpush3.bf16.msra.mxu1 %v1001_v7 }
  0x62   : > { %904 = vmatprep.subr.bf16.mxu1 %v1002_v9 }
  0x63   : > { %873 = vmatpush3.bf16.msra.mxu0 %v994_v3 }
  0x64   : > { %874 = vmatprep.subr.bf16.mxu0 %v995_v6 }
  0x65   : > { %905 = vmatpush3.bf16.msra.mxu1 %v1002_v9 }
  0x66   : > { %906 = vmatprep.subr.bf16.mxu1 %v1003_v11 }
  0x67   : > { %875 = vmatpush3.bf16.msra.mxu0 %v995_v6 }
  0x68   : > { %876 = vmatprep.subr.bf16.mxu0 %v996_v8 }
  0x69   : > { %907 = vmatpush3.bf16.msra.mxu1 %v1003_v11 }
  0x6a   : > { %908 = vmatprep.subr.bf16.mxu1 %v1004_v13 }
  0x6b   : > { %877 = vmatpush3.bf16.msra.mxu0 %v996_v8 }
  0x6c   : > { %878 = vmatprep.subr.bf16.mxu0 %v997_v10 }
  0x6d   : > { %909 = vmatpush3.bf16.msra.mxu1 %v1004_v13 }
  0x6e   : > { %910 = vmatprep.subr.bf16.mxu1 %v1005_v14 }
  0x6f   : > { %879 = vmatpush3.bf16.msra.mxu0 %v997_v10 }
  0x70   : > { %880 = vmatprep.subr.bf16.mxu0 %v998_v12 }
  0x71   : > { %911 = vmatpush3.bf16.msra.mxu1 %v1005_v14 }
  0x72   : > { %912 = vmatprep.subr.bf16.mxu1 %v1006_v15 }
  0x73   : > { %881 = vmatpush3.bf16.msra.mxu0 %v998_v12 }
  0x75   : > { %913 = vmatpush3.bf16.msra.mxu1 %v1006_v15 }
  0x76   : > { %883 = vmatmul.mubr.bf16.vlgmr.msra.gmra.mrb[0].mxu0 %v1000_v5 }
  0x77   : > { %886 = vmatprep.mubr.bf16.mxu0 %v1001_v7 }
  0x7e   : > { %887 = vmatmul.mubr.bf16.gmra.mrb[4].mxu0 %v1002_v9 }
  0x7f   : > { %890 = vmatprep.mubr.bf16.mxu0 %v1003_v11 }
  0x86   : > { %891 = vmatmul.mubr.bf16.gmra.mrb[8].mxu0 %v1004_v13 }
  0x87   : > { %894 = vmatprep.mubr.bf16.mxu0 %v1005_v14 }
  0x8e   : > { %895 = vmatmul.mubr.bf16.gmra.mrb[12].mxu0 %v1006_v15 }
 0x149   : > { %v884_v17 = vpop.f32.mrb[0].mxu0 }
 0x14a   : > { %v383_v18 = vadd.f32 %v884_v17, %v810_v16  ;;  %v374_v19 = vpop.f32.mrb[1].mxu0 }
 0x14b   : > { %v375_v20 = vadd.f32 %v810_v16, %v374_v19  ;;  %v885_v21 = vpop.f32.mrb[2].mxu0 }
 0x14c   : > { %441 = vmax.xlane.f32.xlu1 %v383_v18  ;;  %v377_v22 = vpop.f32.mrb[3].mxu0  ;;  %v386_v23 = vadd.f32 %v885_v21, %v810_v16 }
 0x14d   : > { %437 = vmax.xlane.f32.xlu0 %v375_v20  ;;  %v378_v24 = vadd.f32 %v810_v16, %v377_v22 }
 0x150   : > { %443 = vmax.xlane.f32.xlu1 %v386_v23 }
 0x151   : > { %v888_v25 = vpop.f32.mrb[4].mxu0  ;;  %439 = vmax.xlane.f32.xlu0 %v378_v24 }
 0x152   : > { %v390_v26 = vpop.f32.mrb[5].mxu0  ;;  %v399_v31 = vadd.f32 %v888_v25, %v810_v16 }
 0x153   : > { %v391_v27 = vadd.f32 %v810_v16, %v390_v26  ;;  %v889_v28 = vpop.f32.mrb[6].mxu0 }
 0x154   : > { %v393_v29 = vpop.f32.mrb[7].mxu0  ;;  %v402_v32 = vadd.f32 %v889_v28, %v810_v16 }
 0x155   : > { %v394_v30 = vadd.f32 %v810_v16, %v393_v29  ;;  %445 = vmax.xlane.f32.xlu0 %v391_v27 }
 0x157   : > { %447 = vmax.xlane.f32.xlu1 %v394_v30 }
 0x159   : > { %v892_v33 = vpop.f32.mrb[8].mxu0  ;;  %449 = vmax.xlane.f32.xlu0 %v399_v31 }
 0x15a   : > { %v406_v34 = vpop.f32.mrb[9].mxu0  ;;  %v1400_v39 = vadd.f32 %v892_v33, %v810_v16 }
 0x15b   : > { %v407_v35 = vadd.f32 %v810_v16, %v406_v34  ;;  %v893_v36 = vpop.f32.mrb[10].mxu0  ;;  %451 = vmax.xlane.f32.xlu1 %v402_v32 }
 0x15c   : > { %v409_v37 = vpop.f32.mrb[11].mxu0  ;;  %v1403_v40 = vadd.f32 %v893_v36, %v810_v16 }
 0x15d   : > { %v1398_v38 = vadd.f32 %v810_v16, %v409_v37  ;;  %453 = vmax.xlane.f32.xlu0 %v407_v35 }
 0x15f   : > { %455 = vmax.xlane.f32.xlu1 %v1398_v38 }
 0x161   : > { %v896_v41 = vpop.f32.mrb[12].mxu0  ;;  %457 = vmax.xlane.f32.xlu0 %v1400_v39 }
 0x162   : > { %v422_v42 = vpop.f32.mrb[13].mxu0  ;;  %v1412_v47 = vadd.f32 %v896_v41, %v810_v16 }
 0x163   : > { %v1406_v43 = vadd.f32 %v810_v16, %v422_v42  ;;  %v897_v44 = vpop.f32.mrb[14].mxu0  ;;  %459 = vmax.xlane.f32.xlu1 %v1403_v40 }
 0x164   : > { %v425_v45 = vpop.f32.mrb[15].mxu0  ;;  %v1415_v48 = vadd.f32 %v897_v44, %v810_v16 }
 0x165   : > { %v1409_v46 = vadd.f32 %v810_v16, %v425_v45  ;;  %461 = vmax.xlane.f32.xlu0 %v1406_v43 }
 0x167   : > { %463 = vmax.xlane.f32.xlu1 %v1409_v46 }
 0x169   : > { %465 = vmax.xlane.f32.xlu0 %v1412_v47 }
 0x16b   : > { %467 = vmax.xlane.f32.xlu1 %v1415_v48 }
 0x1d9   : > { %v442_v49 = vpop.xlane.xlu1 %441 }
 0x1da   : > { %v471_v50 = vsub.f32 %v383_v18, %v442_v49  ;;  %v438_v51 = vpop.xlane.xlu0 %437 }
 0x1db   : > { %v469_v52 = vsub.f32 %v375_v20, %v438_v51 }
 0x1dc   : > { %v489_v55 = vmul.f32 1.442695, %v471_v50 }
 0x1dd   : > { %v485_v53 = vmul.f32 1.442695, %v469_v52  ;;  %v444_v54 = vpop.xlane.xlu1 %443 }
 0x1de   : > { %v472_v56 = vsub.f32 %v386_v23, %v444_v54  ;;  %v440_v57 = vpop.xlane.xlu0 %439 }
 0x1df   : > { %1007 = vpow2.f32 %v485_v53  ;;  %v470_v58 = vsub.f32 %v378_v24, %v440_v57 }
 0x1e0   : > { %1009 = vpow2.f32 %v489_v55  ;;  %v491_v60 = vmul.f32 1.442695, %v472_v56 }
 0x1e1   : > { %v487_v59 = vmul.f32 1.442695, %v470_v58 }
 0x1e2   : > { %v446_v61 = vpop.xlane.xlu0 %445 }
 0x1e3   : > { %1011 = vpow2.f32 %v487_v59  ;;  %v473_v62 = vsub.f32 %v391_v27, %v446_v61 }
 0x1e4   : > { %v448_v63 = vpop.xlane.xlu1 %447  ;;  %1013 = vpow2.f32 %v491_v60 }
 0x1e5   : > { %v493_v0 = vmul.f32 1.442695, %v473_v62  ;;  %v474_v1 = vsub.f32 %v394_v30, %v448_v63 }
 0x1e6   : > { %v450_v2 = vpop.xlane.xlu0 %449 }
 0x1e7   : > { %1015 = vpow2.f32 %v493_v0  ;;  %v495_v3 = vmul.f32 1.442695, %v474_v1  ;;  %v475_v4 = vsub.f32 %v399_v31, %v450_v2 }
 0x1e8   : > { %v452_v5 = vpop.xlane.xlu1 %451 }
 0x1e9   : > { %v1419_v6 = vpop.eup %1007  ;;  %v497_v7 = vmul.f32 1.442695, %v475_v4  ;;  %v476_v8 = vsub.f32 %v402_v32, %v452_v5  ;;  %1017 = vpow2.f32 %v495_v3 }
 0x1ea   : > { %517 = vadd.xlane.f32.xlu0 %v1419_v6  ;;  %v454_v9 = vpop.xlane.xlu0 %453  ;;  %v1422_v12 = vpop.eup %1009 }
 0x1eb   : > { %1019 = vpow2.f32 %v497_v7  ;;  %v499_v10 = vmul.f32 1.442695, %v476_v8  ;;  %v477_v11 = vsub.f32 %v407_v35, %v454_v9 }
 0x1ec   : > { %v456_v13 = vpop.xlane.xlu1 %455 }
 0x1ed   : > { %v1424_v14 = vpop.eup %1011  ;;  %v501_v15 = vmul.f32 1.442695, %v477_v11  ;;  %v478_v16 = vsub.f32 %v1398_v38, %v456_v13  ;;  %1021 = vpow2.f32 %v499_v10 }
 0x1ee   : > { %521 = vadd.xlane.f32.xlu0 %v1422_v12  ;;  %519 = vadd.xlane.f32.xlu1 %v1424_v14  ;;  %v458_v17 = vpop.xlane.xlu0 %457  ;;  %v1430_v20 = vpop.eup %1013 }
 0x1ef   : > { %1023 = vpow2.f32 %v501_v15  ;;  %v503_v18 = vmul.f32 1.442695, %v478_v16  ;;  %v479_v19 = vsub.f32 %v1400_v39, %v458_v17 }
 0x1f0   : > { %v460_v21 = vpop.xlane.xlu1 %459 }
 0x1f1   : > { %v1432_v22 = vpop.eup %1015  ;;  %v505_v23 = vmul.f32 1.442695, %v479_v19  ;;  %v480_v24 = vsub.f32 %v1403_v40, %v460_v21  ;;  %1025 = vpow2.f32 %v503_v18 }
 0x1f2   : > { %523 = vadd.xlane.f32.xlu1 %v1430_v20  ;;  %525 = vadd.xlane.f32.xlu0 %v1432_v22  ;;  %v462_v25 = vpop.xlane.xlu0 %461 }
 0x1f3   : > { %1027 = vpow2.f32 %v505_v23  ;;  %v507_v26 = vmul.f32 1.442695, %v480_v24  ;;  %v481_v27 = vsub.f32 %v1406_v43, %v462_v25  ;;  %v1438_v28 = vpop.eup %1017 }
 0x1f4   : > { %v464_v29 = vpop.xlane.xlu1 %463 }
 0x1f5   : > { %v1440_v30 = vpop.eup %1019  ;;  %v509_v31 = vmul.f32 1.442695, %v481_v27  ;;  %v482_v32 = vsub.f32 %v1409_v46, %v464_v29  ;;  %1029 = vpow2.f32 %v507_v26 }
 0x1f6   : > { %527 = vadd.xlane.f32.xlu1 %v1438_v28  ;;  %529 = vadd.xlane.f32.xlu0 %v1440_v30  ;;  %v466_v33 = vpop.xlane.xlu0 %465 }
 0x1f7   : > { %1031 = vpow2.f32 %v509_v31  ;;  %v511_v34 = vmul.f32 1.442695, %v482_v32  ;;  %v483_v35 = vsub.f32 %v1412_v47, %v466_v33  ;;  %v1446_v36 = vpop.eup %1021 }
 0x1f8   : > { %v468_v37 = vpop.xlane.xlu1 %467 }
 0x1f9   : > { %v1448_v38 = vpop.eup %1023  ;;  %v513_v39 = vmul.f32 1.442695, %v483_v35  ;;  %v484_v40 = vsub.f32 %v1415_v48, %v468_v37  ;;  %1033 = vpow2.f32 %v511_v34 }
 0x1fa   : > { %531 = vadd.xlane.f32.xlu1 %v1446_v36  ;;  %533 = vadd.xlane.f32.xlu0 %v1448_v38 }
 0x1fb   : > { %1035 = vpow2.f32 %v513_v39  ;;  %v515_v41 = vmul.f32 1.442695, %v484_v40  ;;  %v1453_v42 = vpop.eup %1025 }
 0x1fd   : > { %v1455_v43 = vpop.eup %1027  ;;  %1037 = vpow2.f32 %v515_v41 }
 0x1fe   : > { %535 = vadd.xlane.f32.xlu1 %v1453_v42  ;;  %537 = vadd.xlane.f32.xlu0 %v1455_v43 }
 0x1ff   : > { %v1459_v44 = vpop.eup %1029 }
 0x201   : > { %v1461_v45 = vpop.eup %1031 }
 0x202   : > { %539 = vadd.xlane.f32.xlu1 %v1459_v44  ;;  %541 = vadd.xlane.f32.xlu0 %v1461_v45 }
 0x203   : > { %v1465_v46 = vpop.eup %1033 }
 0x205   : > { %v1467_v47 = vpop.eup %1035 }
 0x206   : > { %543 = vadd.xlane.f32.xlu1 %v1465_v46  ;;  %545 = vadd.xlane.f32.xlu0 %v1467_v47 }
 0x207   : > { %v1471_v48 = vpop.eup %1037 }
 0x20a   : > { %547 = vadd.xlane.f32.xlu1 %v1471_v48 }
 0x277   : > { %v518_v49 = vpop.xlane.xlu0 %517 }
 0x278   : > { %1039 = vrcp.f32 %v518_v49 }
 0x27b   : > { %v520_v50 = vpop.xlane.xlu1 %519  ;;  %v522_v51 = vpop.xlane.xlu0 %521 }
 0x27c   : > { %1041 = vrcp.f32 %v520_v50 }
 0x27d   : > { %1043 = vrcp.f32 %v522_v51 }
 0x27f   : > { %v524_v52 = vpop.xlane.xlu1 %523  ;;  %v526_v53 = vpop.xlane.xlu0 %525 }
 0x280   : > { %1045 = vrcp.f32 %v524_v52 }
 0x281   : > { %1047 = vrcp.f32 %v526_v53 }
 0x282   : > { %v1040_v56 = vpop.eup %1039 }
 0x283   : > { %v528_v54 = vpop.xlane.xlu1 %527  ;;  %v530_v55 = vpop.xlane.xlu0 %529  ;;  %v550_v60 = vmul.f32 %v1040_v56, %v1419_v6 }
 0x284   : > { %1049 = vrcp.f32 %v528_v54 }
 0x285   : > { %1051 = vrcp.f32 %v530_v55 }
 0x286   : > { %v1042_v57 = vpop.eup %1041 }
 0x287   : > { %v532_v58 = vpop.xlane.xlu1 %531  ;;  %v534_v59 = vpop.xlane.xlu0 %533  ;;  %v552_v61 = vmul.f32 %v1042_v57, %v1424_v14 }
 0x288   : > { %v1044_v62 = vpop.eup %1043  ;;  %1053 = vrcp.f32 %v532_v58 }
 0x289   : > { %v581_v63 = vpack.c.bf16 %v552_v61, %v550_v60  ;;  %1055 = vrcp.f32 %v534_v59  ;;  %v554_v3 = vmul.f32 %v1044_v62, %v1422_v12 }
 0x28a   : > { %v1046_v0 = vpop.eup %1045 }
 0x28b   : > { %v536_v1 = vpop.xlane.xlu1 %535  ;;  %914 = vmatprep.mubr.bf16.mxu1 %v581_v63  ;;  %v538_v2 = vpop.xlane.xlu0 %537  ;;  %v556_v4 = vmul.f32 %v1046_v0, %v1430_v20 }
 0x28c   : > { %v1048_v5 = vpop.eup %1047  ;;  %1057 = vrcp.f32 %v536_v1 }
 0x28d   : > { %v582_v7 = vpack.c.bf16 %v556_v4, %v554_v3  ;;  %1059 = vrcp.f32 %v538_v2  ;;  %v558_v10 = vmul.f32 %v1048_v5, %v1432_v22 }
 0x28e   : > { %v1050_v8 = vpop.eup %1049 }
 0x28f   : > { %v540_v6 = vpop.xlane.xlu1 %539  ;;  %915 = vmatmul.mubr.bf16.vlgmr.msra.gmra.mrb[0].mxu1 %v582_v7  ;;  %v542_v9 = vpop.xlane.xlu0 %541  ;;  %v560_v11 = vmul.f32 %v1050_v8, %v1438_v28 }
 0x290   : > { %v1052_v13 = vpop.eup %1051  ;;  %1061 = vrcp.f32 %v540_v6 }
 0x291   : > { %v583_v14 = vpack.c.bf16 %v560_v11, %v558_v10  ;;  %1063 = vrcp.f32 %v542_v9  ;;  %v562_v17 = vmul.f32 %v1052_v13, %v1440_v30 }
 0x292   : > { %v1054_v15 = vpop.eup %1053 }
 0x293   : > { %v544_v12 = vpop.xlane.xlu1 %543  ;;  %918 = vmatprep.mubr.bf16.mxu1 %v583_v14  ;;  %v546_v16 = vpop.xlane.xlu0 %545  ;;  %v564_v18 = vmul.f32 %v1054_v15, %v1446_v36 }
 0x294   : > { %v1056_v19 = vpop.eup %1055  ;;  %1065 = vrcp.f32 %v544_v12 }
 0x295   : > { %v584_v20 = vpack.c.bf16 %v564_v18, %v562_v17  ;;  %1067 = vrcp.f32 %v546_v16  ;;  %v566_v23 = vmul.f32 %v1056_v19, %v1448_v38 }
 0x296   : > { %v1058_v21 = vpop.eup %1057 }
 0x297   : > { %v548_v22 = vpop.xlane.xlu1 %547  ;;  %919 = vmatmul.mubr.bf16.gmra.mrb[4].mxu1 %v584_v20  ;;  %v568_v24 = vmul.f32 %v1058_v21, %v1453_v42  ;;  %v1060_v25 = vpop.eup %1059 }
 0x298   : > { %1069 = vrcp.f32 %v548_v22  ;;  %v570_v28 = vmul.f32 %v1060_v25, %v1455_v43 }
 0x299   : > { %v585_v26 = vpack.c.bf16 %v568_v24, %v566_v23 }
 0x29a   : > { %v1062_v27 = vpop.eup %1061 }
 0x29b   : > { %922 = vmatprep.mubr.bf16.mxu1 %v585_v26  ;;  %v572_v29 = vmul.f32 %v1062_v27, %v1459_v44  ;;  %v1064_v30 = vpop.eup %1063 }
 0x29c   : > { %v574_v33 = vmul.f32 %v1064_v30, %v1461_v45 }
 0x29d   : > { %v586_v31 = vpack.c.bf16 %v572_v29, %v570_v28 }
 0x29e   : > { %v1066_v32 = vpop.eup %1065 }
 0x29f   : > { %923 = vmatmul.mubr.bf16.gmra.mrb[8].mxu1 %v586_v31  ;;  %v576_v34 = vmul.f32 %v1066_v32, %v1465_v46  ;;  %v1068_v35 = vpop.eup %1067 }
 0x2a0   : > { %v578_v38 = vmul.f32 %v1068_v35, %v1467_v47 }
 0x2a1   : > { %v587_v36 = vpack.c.bf16 %v576_v34, %v574_v33 }
 0x2a2   : > { %v1070_v37 = vpop.eup %1069 }
 0x2a3   : > { %926 = vmatprep.mubr.bf16.mxu1 %v587_v36  ;;  %v580_v39 = vmul.f32 %v1070_v37, %v1471_v48 }
 0x2a5   : > { %v588_v40 = vpack.c.bf16 %v580_v39, %v578_v38 }
 0x2a7   : > { %927 = vmatmul.mubr.bf16.gmra.mrb[12].mxu1 %v588_v40 }
 0x362   : > { %v916_v41 = vpop.f32.mrb[0].mxu1 }
 0x363   : > { %688 = vst [vmem:[%s1491_s9 + $0x10] sm:$0xff] %v916_v41  ;;  %v623_v42 = vpop.f32.mrb[1].mxu1 }
 0x364   : > { %686 = vst [vmem:[%s1491_s9] sm:$0xff] %v623_v42  ;;  %v917_v43 = vpop.f32.mrb[2].mxu1 }
 0x365   : > { %689 = vst [vmem:[%s1491_s9 + $0x18] sm:$0xff] %v917_v43  ;;  %v626_v44 = vpop.f32.mrb[3].mxu1 }
 0x366   : > { %687 = vst [vmem:[%s1491_s9 + $0x8] sm:$0xff] %v626_v44 }
 0x36a   : > { %v920_v45 = vpop.f32.mrb[4].mxu1 }
 0x36b   : > { %692 = vst [vmem:[%s1491_s9 + $0x30] sm:$0xff] %v920_v45  ;;  %v639_v46 = vpop.f32.mrb[5].mxu1 }
 0x36c   : > { %690 = vst [vmem:[%s1491_s9 + $0x20] sm:$0xff] %v639_v46  ;;  %v921_v47 = vpop.f32.mrb[6].mxu1 }
 0x36d   : > { %693 = vst [vmem:[%s1491_s9 + $0x38] sm:$0xff] %v921_v47  ;;  %v642_v48 = vpop.f32.mrb[7].mxu1 }
 0x36e   : > { %691 = vst [vmem:[%s1491_s9 + $0x28] sm:$0xff] %v642_v48 }
 0x372   : > { %v924_v49 = vpop.f32.mrb[8].mxu1 }
 0x373   : > { %696 = vst [vmem:[%s1491_s9 + $0x50] sm:$0xff] %v924_v49  ;;  %v655_v50 = vpop.f32.mrb[9].mxu1 }
 0x374   : > { %694 = vst [vmem:[%s1491_s9 + $0x40] sm:$0xff] %v655_v50  ;;  %v925_v51 = vpop.f32.mrb[10].mxu1 }
 0x375   : > { %697 = vst [vmem:[%s1491_s9 + $0x58] sm:$0xff] %v925_v51  ;;  %v658_v52 = vpop.f32.mrb[11].mxu1 }
 0x376   : > { %695 = vst [vmem:[%s1491_s9 + $0x48] sm:$0xff] %v658_v52 }
 0x37a   : > { %v928_v53 = vpop.f32.mrb[12].mxu1 }
 0x37b   : > { %700 = vst [vmem:[%s1491_s9 + $0x70] sm:$0xff] %v928_v53  ;;  %v671_v54 = vpop.f32.mrb[13].mxu1 }
 0x37c   : > { %698 = vst [vmem:[%s1491_s9 + $0x60] sm:$0xff] %v671_v54  ;;  %v929_v55 = vpop.f32.mrb[14].mxu1 }
 0x37d   : > { %701 = vst [vmem:[%s1491_s9 + $0x78] sm:$0xff] %v929_v55  ;;  %v674_v56 = vpop.f32.mrb[15].mxu1 }
 0x37e   : > { %699 = vst [vmem:[%s1491_s9 + $0x68] sm:$0xff] %v674_v56 }
 0x37f   : > { %1142 = shalt.err (!%p1139_p7)
}
 0x380   : > { %s1143_s22 = scalar_lea.hbm %s1511_s27, 2048  ;;  %s1147_s11 = scalar_lea.hbm %s1563_s3, 4096 }
 0x381   : > { %p1144_p9 = scmp.ne.s32.totalorder %s1511_s27, %s1143_s22  ;;  %p1148_p5 = scmp.lt.u32.totalorder %s1511_s27, %s1563_s3 }
 0x382   : > { %p1149_p11 = scmp.lt.u32.totalorder %s1147_s11, %s1143_s22  ;;  %p1151_p4 = scmp.lt.u32.totalorder %s1143_s22, %s1511_s27 }
 0x383   : > { %p1145_p1 = pnand %p1144_p9, %p1322_p12 }
 0x384   : > { %p1150_p2 = por %p1149_p11, %p1148_p5 }
 0x385   : > { %p1146_p0 = pneg %p1145_p1 }
 0x386   : > { %p1152_p6 = por %p1151_p4, %p1150_p2 }
 0x388   : > { %p1153_p8 = pnand %p1152_p6, %p1146_p0 }
 0x38a   : > { %1156 = shalt.err (!%p1153_p8)
}
 0x38b   : > { %s1206_s8 = smov 128   ;;  %s1207_s9 = smov 8  }
 0x38c   : > { %936 = dma.vmem_to_hbm [thread:$0]  (%p1322_p12), %s1513_s25, 2048, %s1511_s27, %s703_s16, %s1206_s8, %s1206_s8, %s1207_s9  }
 0x38d PF: > { %s731_s4 = sand.u32 1, %s1187_s12   ;;  %p1578_p10 = scmp.ne.s32.totalorder %s1568_s19, 0 }
 0x38e   : > { %p1579_p13 = scmp.ge.s32.totalorder %s1199_s15, 2  ;;  %s732_s26 = scalar_lea.sflag [#allocation4], %s731_s4 }
 0x390   : > { %p947_p3 = pnand %p1579_p13, %p1578_p10 }
 0x392   : > { %1182 = dma.done.wait (!%p947_p3), %s732_s26, 2048  }
 0x393   : > { %1184 = vsyncadd (!%p947_p3), %s732_s26, 4294965248  ;;  %p17_p7 = scmp.ge.s32.totalorder %s1284_s24, 4   ;;  %s1580_s12 = smov %s1191_s13 }
 0x394   : > { %s1581_s13 = smov %s1195_s14  ;;  %s1582_s14 = smov %s1318_s17 }
 0x395   : > { %s1583_s15 = smov %s1284_s24  ;;  %19 = sbr.rel (!%p17_p7) target bundleno = 6 (0x6), region = 81 }
 0x39c   :  { %737 = vsyncpa [#allocation3], 1 }
 0x39d   :  { %739 = vsyncpa [#allocation3 + $0x1], 1 }
 0x39e   :  { %740 = vsyncpa [#allocation6], 1 }
 0x39f   :  { %741 = vsyncpa [#allocation4], 1 }
 0x3a0   :  { %743 = vsyncpa [#allocation4 + $0x1], 1 }

</bundles_post_ra>
